<compile_context>
chip_gen: v6e
topology: v6e:2x2x1
jax: 0.10.0
libtpu: 0.0.40
codegen_flags: <defaults>
</compile_context>

<pallas_src>
import jax
import jax.numpy as jnp
from jax.experimental import pallas as pl
from jax.experimental.pallas import tpu as pltpu

EPS = 1e-5  # torch.nn.BatchNorm1d default


def _bn_scale_shift(h, gamma, beta):
    """Fold training-mode BatchNorm1d (batch mean, biased batch var) into one FMA."""
    mean = jnp.mean(h, axis=0, keepdims=True)                        # [1, T] f32
    var = jnp.mean((h - mean) * (h - mean), axis=0, keepdims=True)   # biased var
    scale = gamma * jax.lax.rsqrt(var + EPS)
    shift = beta - mean * scale
    return scale, shift


def dense_block_kernel(xres_ref, xb_ref, w1_ref, b1_ref, g1_ref, be1_ref,
                       w2_ref, b2_ref, g2_ref, be2_ref, o_ref, acc_ref):
    k = pl.program_id(1)

    @pl.when(k == 0)
    def _init():
        acc_ref[...] = jnp.zeros_like(acc_ref)

    # ---- stage 1: K-tile of hidden = BN1(ReLU(x @ W1[:, ktile] + b1)) -------
    h = jnp.dot(xb_ref[...], w1_ref[...], preferred_element_type=jnp.float32)
    h = jnp.maximum(h + b1_ref[...], 0.0)                            # [B, TK] f32
    s1, t1 = _bn_scale_shift(h, g1_ref[...], be1_ref[...])
    h = h * s1 + t1                                                  # folded BN FMA

    # ---- stage 2 partial: acc += hidden_ktile @ W2[ktile, jtile] ------------
    acc_ref[...] += jnp.dot(h.astype(jnp.bfloat16), w2_ref[...],
                            preferred_element_type=jnp.float32)

    # ---- finalize output tile j: bias, ReLU, BN2, residual ------------------
    @pl.when(k == pl.num_programs(1) - 1)
    def _finalize():
        z = jnp.maximum(acc_ref[...] + b2_ref[...], 0.0)             # [B, TN] f32
        s2, t2 = _bn_scale_shift(z, g2_ref[...], be2_ref[...])
        o_ref[...] = z * s2 + t2 + xres_ref[...]


def dense_block(x, w1, b1, g1, be1, w2, b2, g2, be2, *, tn=128, tk=128):
    """x: [B, F] f32.  w*: [F, F] stored transposed as (in, out).  b*/g*/be*: [F].

    Requires in_features == out_features (residual), B % 8 == 0, F % tn == 0,
    F % tk == 0.
    """
    B, F = x.shape
    assert B % 8 == 0 and F % tn == 0 and F % tk == 0
    J, K = F // tn, F // tk

    x = x.astype(jnp.float32)
    row = lambda v: v.reshape(1, F).astype(jnp.float32)
    bf16 = jnp.bfloat16

    grid_spec = pltpu.PrefetchScalarGridSpec(
        num_scalar_prefetch=0,
        grid=(J, K),
        in_specs=[
            pl.BlockSpec((B, tn), lambda j, k: (0, j)),    # x residual tile (f32)
            pl.BlockSpec((B, F),  lambda j, k: (0, 0)),    # x matmul LHS (bf16, resident)
            pl.BlockSpec((F, tk), lambda j, k: (0, k)),    # W1 K-tile (bf16)
            pl.BlockSpec((1, tk), lambda j, k: (0, k)),    # b1
            pl.BlockSpec((1, tk), lambda j, k: (0, k)),    # gamma1
            pl.BlockSpec((1, tk), lambda j, k: (0, k)),    # beta1
            pl.BlockSpec((tk, tn), lambda j, k: (k, j)),   # W2 (K, N)-tile (bf16)
            pl.BlockSpec((1, tn), lambda j, k: (0, j)),    # b2
            pl.BlockSpec((1, tn), lambda j, k: (0, j)),    # gamma2
            pl.BlockSpec((1, tn), lambda j, k: (0, j)),    # beta2
        ],
        out_specs=pl.BlockSpec((B, tn), lambda j, k: (0, j)),
        scratch_shapes=[pltpu.VMEM((B, tn), jnp.float32)],
    )

    return pl.pallas_call(
        dense_block_kernel,
        out_shape=jax.ShapeDtypeStruct((B, F), jnp.float32),
        grid_spec=grid_spec,
        compiler_params=pltpu.CompilerParams(
            dimension_semantics=("parallel", "arbitrary"),
            vmem_limit_bytes=32 * 1024 * 1024,
        ),
        input_output_aliases={0: 0},   # output reuses x's HBM buffer
    )(x, x.astype(bf16), w1.astype(bf16), row(b1), row(g1), row(be1),
      w2.astype(bf16), row(b2), row(g2), row(be2))


# ----------------------------- references -----------------------------------
def reference_f32(x, w1, b1, g1, be1, w2, b2, g2, be2):
    """Pure-f32 JAX mirror of the PyTorch forward (training-mode BN)."""
    def bn(h, g, be):
        m = h.mean(axis=0, keepdims=True)
        v = ((h - m) ** 2).mean(axis=0, keepdims=True)
        return (h - m) * jax.lax.rsqrt(v + EPS) * g + be
    h = jnp.maximum(x @ w1 + b1, 0.0)
    h = bn(h, g1, be1)
    h = jnp.maximum(h @ w2 + b2, 0.0)
    h = bn(h, g2, be2)
    return h + x


def reference_mixed(x, w1, b1, g1, be1, w2, b2, g2, be2):
    """Mirror of the kernel's numerics: bf16 matmul operands, f32 everything else."""
    bf = jnp.bfloat16
    def bn(h, g, be):
        m = h.mean(axis=0, keepdims=True)
        v = ((h - m) ** 2).mean(axis=0, keepdims=True)
        s = g * jax.lax.rsqrt(v + EPS)
        return h * s + (be - m * s)
    h = jnp.dot(x.astype(bf), w1.astype(bf), preferred_element_type=jnp.float32) + b1
    h = bn(jnp.maximum(h, 0.0), g1, be1)
    h = jnp.dot(h.astype(bf), w2.astype(bf), preferred_element_type=jnp.float32) + b2
    h = bn(jnp.maximum(h, 0.0), g2, be2)
    return h + x


if __name__ == "__main__":
    # lane-dense feature dim (multiple of 128), sublane-friendly batch (multiple of 8)
    B, F = 64, 256
    key = jax.random.PRNGKey(0)
    kx, kw1, kb1, kw2, kb2, kg1, kbe1, kg2, kbe2 = jax.random.split(key, 9)

    x = jax.random.normal(kx, (B, F), dtype=jnp.float32)

    bound = 1.0 / (F ** 0.5)  # nn.Linear default init; weights stored as [in, out]
    w1 = jax.random.uniform(kw1, (F, F), jnp.float32, -bound, bound)
    b1 = jax.random.uniform(kb1, (F,), jnp.float32, -bound, bound)
    w2 = jax.random.uniform(kw2, (F, F), jnp.float32, -bound, bound)
    b2 = jax.random.uniform(kb2, (F,), jnp.float32, -bound, bound)

    # deterministic, non-trivial BN affine params to exercise the folded FMA path
    g1 = 1.0 + 0.1 * jax.random.normal(kg1, (F,), jnp.float32)
    be1 = 0.1 * jax.random.normal(kbe1, (F,), jnp.float32)
    g2 = 1.0 + 0.1 * jax.random.normal(kg2, (F,), jnp.float32)
    be2 = 0.1 * jax.random.normal(kbe2, (F,), jnp.float32)

    args = (x, w1, b1, g1, be1, w2, b2, g2, be2)

    # compute references before the kernel (input 0 is aliased with the output)
    ref_mixed = jax.block_until_ready(reference_mixed(*args))
    ref_f32 = jax.block_until_ready(reference_f32(*args))

    out = jax.block_until_ready(dense_block(*args))

    assert out.shape == (B, F) and out.dtype == jnp.float32
    # tight check vs. a reference with identical (bf16-operand / f32-accum) numerics
    assert jnp.allclose(out, ref_mixed, atol=2e-3, rtol=2e-3), (
        f"mismatch vs mixed ref: max abs diff {jnp.max(jnp.abs(out - ref_mixed))}")
    # looser check vs. exact f32 PyTorch semantics (bounds the bf16 approximation)
    assert jnp.allclose(out, ref_f32, atol=5e-2, rtol=5e-2), (
        f"mismatch vs f32 ref: max abs diff {jnp.max(jnp.abs(out - ref_f32))}")

    print("KERNEL_OK")
</pallas_src>

<mosaic_0001>
module attributes {stable_mosaic.version = 11 : i64} {
  func.func @dense_block_kernel(%arg0: i32, %arg1: i32, %arg2: memref<64x128xf32, #tpu.memory_space<vmem>>, %arg3: memref<64x256xbf16, #tpu.memory_space<vmem>>, %arg4: memref<256x128xbf16, #tpu.memory_space<vmem>>, %arg5: memref<1x128xf32, #tpu.memory_space<vmem>>, %arg6: memref<1x128xf32, #tpu.memory_space<vmem>>, %arg7: memref<1x128xf32, #tpu.memory_space<vmem>>, %arg8: memref<128x128xbf16, #tpu.memory_space<vmem>>, %arg9: memref<1x128xf32, #tpu.memory_space<vmem>>, %arg10: memref<1x128xf32, #tpu.memory_space<vmem>>, %arg11: memref<1x128xf32, #tpu.memory_space<vmem>>, %arg12: memref<64x128xf32, #tpu.memory_space<vmem>>, %arg13: memref<64x128xf32, #tpu.memory_space<vmem>>) attributes {dimension_semantics = [#tpu.dimension_semantics<parallel>, #tpu.dimension_semantics<arbitrary>], iteration_bounds = array<i64: 2, 2>, scalar_prefetch = 0 : i64, scratch_operands = 1 : i64, tpu.core_type = #tpu.core_type<tc>, window_params = [{transform_indices = @transform_0, window_bounds = array<i64: 64, 128>}, {pipeline_mode = #tpu.pipeline_mode<synchronous>, transform_indices = @transform_1, window_bounds = array<i64: 64, 256>}, {transform_indices = @transform_2, window_bounds = array<i64: 256, 128>}, {transform_indices = @transform_3, window_bounds = array<i64: 1, 128>}, {transform_indices = @transform_4, window_bounds = array<i64: 1, 128>}, {transform_indices = @transform_5, window_bounds = array<i64: 1, 128>}, {transform_indices = @transform_6, window_bounds = array<i64: 128, 128>}, {transform_indices = @transform_7, window_bounds = array<i64: 1, 128>}, {transform_indices = @transform_8, window_bounds = array<i64: 1, 128>}, {transform_indices = @transform_9, window_bounds = array<i64: 1, 128>}, {transform_indices = @transform_10, window_bounds = array<i64: 64, 128>}]} {
    %c0_i32 = arith.constant 0 : i32
    %0 = arith.cmpi eq, %arg1, %c0_i32 : i32
    %1 = arith.extui %0 : i1 to i32
    %c0_i32_0 = arith.constant 0 : i32
    %2 = arith.cmpi ne, %1, %c0_i32_0 : i32
    scf.if %2 {
      %cst_24 = arith.constant 0.000000e+00 : f32
      %45 = vector.broadcast %cst_24 : f32 to vector<64x128xf32>
      %c0_25 = arith.constant 0 : index
      %c0_26 = arith.constant 0 : index
      %46 = vector.load %arg13[%c0_25, %c0_26] : memref<64x128xf32, #tpu.memory_space<vmem>>, vector<64x128xf32>
      tpu.vector_store %arg13[%c0_25, %c0_26], %45 {strides = array<i32>} : memref<64x128xf32, #tpu.memory_space<vmem>>, vector<64x128xf32>,
    } else {
    }
    %c0 = arith.constant 0 : index
    %c0_1 = arith.constant 0 : index
    %3 = vector.load %arg3[%c0, %c0_1] : memref<64x256xbf16, #tpu.memory_space<vmem>>, vector<64x256xbf16>
    %c0_2 = arith.constant 0 : index
    %c0_3 = arith.constant 0 : index
    %4 = vector.load %arg4[%c0_2, %c0_3] : memref<256x128xbf16, #tpu.memory_space<vmem>>, vector<256x128xbf16>
    %cst = arith.constant dense<0.000000e+00> : vector<64x128xf32>
    %5 = tpu.matmul %3, %4, %cst {dimension_numbers = #tpu.dot_dimension_numbers<[1], [0], [0], [1], [0, 0, 1, 1], [], []>} : vector<64x256xbf16>, vector<256x128xbf16>, vector<64x128xf32> -> vector<64x128xf32>
    %c0_4 = arith.constant 0 : index
    %c0_5 = arith.constant 0 : index
    %6 = vector.load %arg5[%c0_4, %c0_5] : memref<1x128xf32, #tpu.memory_space<vmem>>, vector<1x128xf32>
    %7 = vector.broadcast %6 : vector<1x128xf32> to vector<64x128xf32>
    %8 = arith.addf %5, %7 : vector<64x128xf32>
    %cst_6 = arith.constant 0.000000e+00 : f32
    %9 = vector.broadcast %cst_6 : f32 to vector<64x128xf32>
    %10 = arith.maximumf %8, %9 : vector<64x128xf32>
    %c0_7 = arith.constant 0 : index
    %c0_8 = arith.constant 0 : index
    %11 = vector.load %arg6[%c0_7, %c0_8] : memref<1x128xf32, #tpu.memory_space<vmem>>, vector<1x128xf32>
    %c0_9 = arith.constant 0 : index
    %c0_10 = arith.constant 0 : index
    %12 = vector.load %arg7[%c0_9, %c0_10] : memref<1x128xf32, #tpu.memory_space<vmem>>, vector<1x128xf32>
    %cst_11 = arith.constant dense<0.000000e+00> : vector<128xf32>
    %13 = vector.multi_reduction <add>, %10, %cst_11 [0] : vector<64x128xf32> to vector<128xf32>
    %14 = vector.shape_cast %13 : vector<128xf32> to vector<1x128xf32>
    %cst_12 = arith.constant 6.400000e+01 : f32
    %15 = vector.broadcast %cst_12 : f32 to vector<1x128xf32>
    %16 = arith.divf %14, %15 : vector<1x128xf32>
    %17 = vector.broadcast %16 : vector<1x128xf32> to vector<64x128xf32>
    %18 = arith.subf %10, %17 : vector<64x128xf32>
    %19 = vector.broadcast %16 : vector<1x128xf32> to vector<64x128xf32>
    %20 = arith.subf %10, %19 : vector<64x128xf32>
    %21 = arith.mulf %18, %20 : vector<64x128xf32>
    %cst_13 = arith.constant dense<0.000000e+00> : vector<128xf32>
    %22 = vector.multi_reduction <add>, %21, %cst_13 [0] : vector<64x128xf32> to vector<128xf32>
    %23 = vector.shape_cast %22 : vector<128xf32> to vector<1x128xf32>
    %cst_14 = arith.constant 6.400000e+01 : f32
    %24 = vector.broadcast %cst_14 : f32 to vector<1x128xf32>
    %25 = arith.divf %23, %24 : vector<1x128xf32>
    %cst_15 = arith.constant 9.99999974E-6 : f32
    %26 = vector.broadcast %cst_15 : f32 to vector<1x128xf32>
    %27 = arith.addf %25, %26 : vector<1x128xf32>
    %28 = math.rsqrt %27 : vector<1x128xf32>
    %29 = arith.mulf %11, %28 : vector<1x128xf32>
    %30 = arith.mulf %16, %29 : vector<1x128xf32>
    %31 = arith.subf %12, %30 : vector<1x128xf32>
    %32 = vector.broadcast %29 : vector<1x128xf32> to vector<64x128xf32>
    %33 = arith.mulf %10, %32 : vector<64x128xf32>
    %34 = vector.broadcast %31 : vector<1x128xf32> to vector<64x128xf32>
    %35 = arith.addf %33, %34 : vector<64x128xf32>
    %c0_16 = arith.constant 0 : index
    %c0_17 = arith.constant 0 : index
    %36 = vector.load %arg13[%c0_16, %c0_17] : memref<64x128xf32, #tpu.memory_space<vmem>>, vector<64x128xf32>
    %37 = arith.truncf %35 : vector<64x128xf32> to vector<64x128xbf16>
    %c0_18 = arith.constant 0 : index
    %c0_19 = arith.constant 0 : index
    %38 = vector.load %arg8[%c0_18, %c0_19] : memref<128x128xbf16, #tpu.memory_space<vmem>>, vector<128x128xbf16>
    %cst_20 = arith.constant dense<0.000000e+00> : vector<64x128xf32>
    %39 = tpu.matmul %37, %38, %cst_20 {dimension_numbers = #tpu.dot_dimension_numbers<[1], [0], [0], [1], [0, 0, 1, 1], [], []>} : vector<64x128xbf16>, vector<128x128xbf16>, vector<64x128xf32> -> vector<64x128xf32>
    %40 = arith.addf %36, %39 : vector<64x128xf32>
    %c0_21 = arith.constant 0 : index
    %c0_22 = arith.constant 0 : index
    %41 = vector.load %arg13[%c0_21, %c0_22] : memref<64x128xf32, #tpu.memory_space<vmem>>, vector<64x128xf32>
    tpu.vector_store %arg13[%c0_21, %c0_22], %40 {strides = array<i32>} : memref<64x128xf32, #tpu.memory_space<vmem>>, vector<64x128xf32>,
    %c1_i32 = arith.constant 1 : i32
    %42 = arith.cmpi eq, %arg1, %c1_i32 : i32
    %43 = arith.extui %42 : i1 to i32
    %c0_i32_23 = arith.constant 0 : i32
    %44 = arith.cmpi ne, %43, %c0_i32_23 : i32
    scf.if %44 {
      %c0_24 = arith.constant 0 : index
      %c0_25 = arith.constant 0 : index
      %45 = vector.load %arg13[%c0_24, %c0_25] : memref<64x128xf32, #tpu.memory_space<vmem>>, vector<64x128xf32>
      %c0_26 = arith.constant 0 : index
      %c0_27 = arith.constant 0 : index
      %46 = vector.load %arg9[%c0_26, %c0_27] : memref<1x128xf32, #tpu.memory_space<vmem>>, vector<1x128xf32>
      %47 = vector.broadcast %46 : vector<1x128xf32> to vector<64x128xf32>
      %48 = arith.addf %45, %47 : vector<64x128xf32>
      %cst_28 = arith.constant 0.000000e+00 : f32
      %49 = vector.broadcast %cst_28 : f32 to vector<64x128xf32>
      %50 = arith.maximumf %48, %49 : vector<64x128xf32>
      %c0_29 = arith.constant 0 : index
      %c0_30 = arith.constant 0 : index
      %51 = vector.load %arg10[%c0_29, %c0_30] : memref<1x128xf32, #tpu.memory_space<vmem>>, vector<1x128xf32>
      %c0_31 = arith.constant 0 : index
      %c0_32 = arith.constant 0 : index
      %52 = vector.load %arg11[%c0_31, %c0_32] : memref<1x128xf32, #tpu.memory_space<vmem>>, vector<1x128xf32>
      %cst_33 = arith.constant dense<0.000000e+00> : vector<128xf32>
      %53 = vector.multi_reduction <add>, %50, %cst_33 [0] : vector<64x128xf32> to vector<128xf32>
      %54 = vector.shape_cast %53 : vector<128xf32> to vector<1x128xf32>
      %cst_34 = arith.constant 6.400000e+01 : f32
      %55 = vector.broadcast %cst_34 : f32 to vector<1x128xf32>
      %56 = arith.divf %54, %55 : vector<1x128xf32>
      %57 = vector.broadcast %56 : vector<1x128xf32> to vector<64x128xf32>
      %58 = arith.subf %50, %57 : vector<64x128xf32>
      %59 = vector.broadcast %56 : vector<1x128xf32> to vector<64x128xf32>
      %60 = arith.subf %50, %59 : vector<64x128xf32>
      %61 = arith.mulf %58, %60 : vector<64x128xf32>
      %cst_35 = arith.constant dense<0.000000e+00> : vector<128xf32>
      %62 = vector.multi_reduction <add>, %61, %cst_35 [0] : vector<64x128xf32> to vector<128xf32>
      %63 = vector.shape_cast %62 : vector<128xf32> to vector<1x128xf32>
      %cst_36 = arith.constant 6.400000e+01 : f32
      %64 = vector.broadcast %cst_36 : f32 to vector<1x128xf32>
      %65 = arith.divf %63, %64 : vector<1x128xf32>
      %cst_37 = arith.constant 9.99999974E-6 : f32
      %66 = vector.broadcast %cst_37 : f32 to vector<1x128xf32>
      %67 = arith.addf %65, %66 : vector<1x128xf32>
      %68 = math.rsqrt %67 : vector<1x128xf32>
      %69 = arith.mulf %51, %68 : vector<1x128xf32>
      %70 = arith.mulf %56, %69 : vector<1x128xf32>
      %71 = arith.subf %52, %70 : vector<1x128xf32>
      %72 = vector.broadcast %69 : vector<1x128xf32> to vector<64x128xf32>
      %73 = arith.mulf %50, %72 : vector<64x128xf32>
      %74 = vector.broadcast %71 : vector<1x128xf32> to vector<64x128xf32>
      %75 = arith.addf %73, %74 : vector<64x128xf32>
      %c0_38 = arith.constant 0 : index
      %c0_39 = arith.constant 0 : index
      %76 = vector.load %arg2[%c0_38, %c0_39] : memref<64x128xf32, #tpu.memory_space<vmem>>, vector<64x128xf32>
      %77 = arith.addf %75, %76 : vector<64x128xf32>
      %c0_40 = arith.constant 0 : index
      %c0_41 = arith.constant 0 : index
      %78 = vector.load %arg12[%c0_40, %c0_41] : memref<64x128xf32, #tpu.memory_space<vmem>>, vector<64x128xf32>
      tpu.vector_store %arg12[%c0_40, %c0_41], %77 {strides = array<i32>} : memref<64x128xf32, #tpu.memory_space<vmem>>, vector<64x128xf32>,
    } else {
    }
    return
  }
  func.func @transform_0(%arg0: i32, %arg1: i32) -> (i32, i32) {
    %c0_i32 = arith.constant 0 : i32
    %c0_i32_0 = arith.constant 0 : i32
    return %c0_i32, %arg0 : i32, i32
  }
  func.func @transform_1(%arg0: i32, %arg1: i32) -> (i32, i32) {
    %c0_i32 = arith.constant 0 : i32
    %c0_i32_0 = arith.constant 0 : i32
    %c0_i32_1 = arith.constant 0 : i32
    return %c0_i32, %c0_i32_0 : i32, i32
  }
  func.func @transform_2(%arg0: i32, %arg1: i32) -> (i32, i32) {
    %c0_i32 = arith.constant 0 : i32
    %c0_i32_0 = arith.constant 0 : i32
    return %c0_i32, %arg1 : i32, i32
  }
  func.func @transform_3(%arg0: i32, %arg1: i32) -> (i32, i32) {
    %c0_i32 = arith.constant 0 : i32
    %c0_i32_0 = arith.constant 0 : i32
    return %c0_i32, %arg1 : i32, i32
  }
  func.func @transform_4(%arg0: i32, %arg1: i32) -> (i32, i32) {
    %c0_i32 = arith.constant 0 : i32
    %c0_i32_0 = arith.constant 0 : i32
    return %c0_i32, %arg1 : i32, i32
  }
  func.func @transform_5(%arg0: i32, %arg1: i32) -> (i32, i32) {
    %c0_i32 = arith.constant 0 : i32
    %c0_i32_0 = arith.constant 0 : i32
    return %c0_i32, %arg1 : i32, i32
  }
  func.func @transform_6(%arg0: i32, %arg1: i32) -> (i32, i32) {
    %c0_i32 = arith.constant 0 : i32
    return %arg1, %arg0 : i32, i32
  }
  func.func @transform_7(%arg0: i32, %arg1: i32) -> (i32, i32) {
    %c0_i32 = arith.constant 0 : i32
    %c0_i32_0 = arith.constant 0 : i32
    return %c0_i32, %arg0 : i32, i32
  }
  func.func @transform_8(%arg0: i32, %arg1: i32) -> (i32, i32) {
    %c0_i32 = arith.constant 0 : i32
    %c0_i32_0 = arith.constant 0 : i32
    return %c0_i32, %arg0 : i32, i32
  }
  func.func @transform_9(%arg0: i32, %arg1: i32) -> (i32, i32) {
    %c0_i32 = arith.constant 0 : i32
    %c0_i32_0 = arith.constant 0 : i32
    return %c0_i32, %arg0 : i32, i32
  }
  func.func @transform_10(%arg0: i32, %arg1: i32) -> (i32, i32) {
    %c0_i32 = arith.constant 0 : i32
    %c0_i32_0 = arith.constant 0 : i32
    return %c0_i32, %arg0 : i32, i32
  }
}

</mosaic_0001>

<bundles_post_ra>
// kernel: tpu_custom_call.1
= control target key start
LH: loop header
LB: loop body
LE: loop exit
PB: predicated region body
PF: predicated region fallthrough
CT: control target
= control target key end

     0   :  { %s2722_s0 = inlined_call_operand.hbm [shape: f32[64,256], index: 0, kind: input, shape index: {}, may-alias: {0,10}]   ;;  %s2723_s1 = inlined_call_operand.hbm [shape: bf16[64,256], index: 1, kind: input, shape index: {}]   ;;  %s2724_s2 = inlined_call_operand.vmem [shape: bf16[256,256], index: 2, kind: input, shape index: {}]   ;;  %s2725_s3 = inlined_call_operand.vmem [shape: f32[1,256], index: 3, kind: input, shape index: {}]   ;;  %s2726_s4 = inlined_call_operand.vmem [shape: f32[1,256], index: 4, kind: input, shape index: {}]   ;;  %s2727_s5 = inlined_call_operand.vmem [shape: f32[1,256], index: 5, kind: input, shape index: {}]   ;;  %s2728_s6 = inlined_call_operand.hbm [shape: bf16[256,256], index: 6, kind: input, shape index: {}]   ;;  %s2729_s7 = inlined_call_operand.vmem [shape: f32[1,256], index: 7, kind: input, shape index: {}]   ;;  %s2730_s8 = inlined_call_operand.vmem [shape: f32[1,256], index: 8, kind: input, shape index: {}]   ;;  %s2731_s9 = inlined_call_operand.vmem [shape: f32[1,256], index: 9, kind: input, shape index: {}]   ;;  %s2732_s10 = inlined_call_operand.hbm [shape: f32[64,256], index: 10, kind: output, shape index: {}, may-alias: {0,10}]  }
   0x1   :  { %2756 = sst [smem:[#allocation32_spill]] %s2722_s0 }
   0x2   :  { %2757 = sst [smem:[#allocation33_spill]] %s2723_s1 }
   0x3   :  { %2758 = sst [smem:[#allocation34_spill]] %s2724_s2 }
   0x4   :  { %2759 = sst [smem:[#allocation35_spill]] %s2725_s3 }
   0x5   :  { %2760 = sst [smem:[#allocation36_spill]] %s2726_s4 }
   0x6   :  { %2761 = sst [smem:[#allocation37_spill]] %s2727_s5 }
   0x7   :  { %2762 = sst [smem:[#allocation38_spill]] %s2728_s6 }
   0x8   :  { %2763 = sst [smem:[#allocation39_spill]] %s2729_s7 }
   0x9   :  { %2764 = sst [smem:[#allocation40_spill]] %s2730_s8 }
   0xa   :  { %2765 = sst [smem:[#allocation41_spill]] %s2731_s9 }
   0xb   :  { %2766 = sst [smem:[#allocation42_spill]] %s2732_s10 }
   0xc   :  { %15 = vsyncpa [#allocation4], 0 }
   0xd   :  { %17 = vsyncpa [#allocation4 + $0x1], 0 }
   0xe   :  { %18 = vsyncpa [#allocation7], 0 }
   0xf   :  { %19 = vsyncpa [#allocation5], 0 }
  0x10   :  { %21 = vsyncpa [#allocation5 + $0x1], 0  ;;  %s2169_s13 = smov 0   ;;  %s2171_s14 = smov 0  }
  0x11   :  { %s2173_s15 = smov 0   ;;  %s2175_s16 = smov 0  }
  0x12   :  { %s2177_s17 = smov 0   ;;  %s2179_s18 = smov 0  }
  0x13   :  { %s2181_s19 = smov 0   ;;  %s2183_s20 = smov 0  }
  0x14   :  { %s2185_s21 = smov 0   ;;  %s2187_s22 = smov 0  }
  0x15   :  { %s2189_s23 = smov 0   ;;  %s2191_s24 = smov 0  }
  0x16   :  { %s2193_s25 = smov 0  }
  0x17 LB: > { %2767 = sst [smem:[#allocation15_spill]] %s2053_s14  ;;  %s2235_s26 = sadd.s32 4294967295, %s2097_s25   ;;  %s2097_s25 = sphi %s2193_s25, %s27_s25   ;;  %s2093_s24 = sphi %s2191_s24, %s2840_s24   ;;  %s2089_s23 = sphi %s2189_s23, %s2839_s23   ;;  %s2085_s22 = sphi %s2187_s22, %s2838_s22   ;;  %s2081_s21 = sphi %s2185_s21, %s2846_s21   ;;  %s2077_s20 = sphi %s2183_s20, %s2836_s20   ;;  %s2073_s19 = sphi %s2181_s19, %s2845_s19   ;;  %s2069_s18 = sphi %s2179_s18, %s2844_s18   ;;  %s2065_s17 = sphi %s2177_s17, %s2834_s17   ;;  %s2061_s16 = sphi %s2175_s16, %s2833_s16   ;;  %s2057_s15 = sphi %s2173_s15, %s2843_s15   ;;  %s2053_s14 = sphi %s2171_s14, %s2842_s14   ;;  %s2049_s13 = sphi %s2169_s13, %s2831_s13  }
  0x18   : > { %2768 = sst [smem:[#allocation16_spill]] %s2061_s16  ;;  %s36_s28 = sadd.s32 1, %s2089_s23 }
  0x19   : > { %2769 = sst [smem:[#allocation17_spill]] %s2065_s17  ;;  %s39_s29 = sadd.s32 1, %s2093_s24 }
  0x1a   : > { %2770 = sst [smem:[#allocation18_spill]] %s2069_s18  ;;  %p37_p0 = scmp.ge.s32.totalorder %s36_s28, 2 }
  0x1b   : > { %2771 = sst [smem:[#allocation19_spill]] %s2077_s20  ;;  %s46_s30 = sadd.s32 1, %s2077_s20 }
  0x1c   : > { %2772 = sst [smem:[#allocation20_spill]] %s2081_s21  ;;  %p53_p1 = scmp.ne.s32.totalorder %s2077_s20, %s2073_s19 }
  0x1d   : > { %2773 = sst [smem:[#allocation21_spill]] %s2085_s22  ;;  %p54_p2 = scmp.eq.s32.totalorder %s2097_s25, 0 }
  0x1e   : > { %2774 = sst [smem:[#allocation22_spill]] %s2089_s23  ;;  %s2848_s28 = smov (%p37_p0, %s36_s28), 0 }
  0x1f   : > { %2775 = sst [smem:[#allocation23_spill]] %s2093_s24  ;;  %s2850_s29 = smov (!%p37_p0, %s39_s29), %s2093_s24 }
  0x20   : > { %2776 = sst [smem:[#allocation24_spill]] %s2848_s28  ;;  %p2252_p3 = por %p54_p2, %p53_p1 }
  0x21   : > { %p2736_p4 = scmp.ne.s32.totalorder %s2073_s19, %s2069_s18  ;;  %p41_p5 = scmp.ge.s32.totalorder %s2850_s29, 2 }
  0x22   : > { %p60_p6 = scmp.eq.s32.totalorder %s2235_s26, 0  ;;  %s90_s12 = ssub.s32 %s2089_s23, %s2848_s28 }
  0x23   : > { %s93_s27 = sadd.s32 1, %s2065_s17  ;;  %s2852_s29 = smov (%p41_p5, %s2850_s29), 0 }
  0x24   : > { %2778 = sst [smem:[#allocation25_spill]] %s2852_s29  ;;  %p2269_p7 = por %p60_p6, %p2736_p4 }
  0x25   : > { %p91_p8 = scmp.eq.s32.totalorder %s90_s12, 0  ;;  %s43_s9 = ssub.s32 %s2093_s24, %s2852_s29 }
  0x26   : > { %s2779_s10 = scalar_select %p2269_p7, 1, 0 }
  0x27   : > { %p100_p9 = scmp.ne.s32.totalorder %s2065_s17, %s2061_s16  ;;  %p44_p10 = scmp.eq.s32.totalorder %s43_s9, 0 }
  0x28   : > { %s196_s28 = sor.u32 %s90_s12, %s43_s9  ;;  %s199_s29 = sadd.s32 1, %s2057_s15 }
  0x29   : > { %s2278_s8 = scalar_select %p91_p8, %s2065_s17, %s93_s27  }
  0x2a   : > { %s2281_s7 = scalar_select %p44_p10, %s2077_s20, %s46_s30  }
  0x2b   : > { %2780 = sst [smem:[#allocation26_spill]] %s2278_s8  ;;  %p2285_p11 = por %p100_p9, %p54_p2 }
  0x2c   : > { %2781 = sst [smem:[#allocation27_spill]] %s2281_s7  ;;  %p197_p12 = scmp.eq.s32.totalorder %s196_s28, 0 }
  0x2d   : > { %s2782_s5 = scalar_select %p2285_p11, 1, 0 }
  0x2e   : > { %p206_p13 = scmp.ne.s32.totalorder %s2057_s15, %s2053_s14  ;;  %p212_p5 = scmp.ne.s32.totalorder %s2053_s14, %s2049_s13 }
  0x2f   : > { %s2293_s4 = scalar_select %p197_p12, %s2057_s15, %s199_s29  }
  0x30   : > { %p2297_p0 = por %p206_p13, %p54_p2  ;;  %p314_p8 = scmp.eq.s32.totalorder %s2235_s26, 3 }
  0x31   : > { %2783 = sst [smem:[#allocation28_spill]] %s2293_s4  ;;  %s2785_s9 = sadd.s32 4294967294, %s2097_s25  }
  0x32   : > { %s2784_s3 = scalar_select %p2297_p0, 1, 0 }
  0x33   : > { %p320_p10 = scmp.eq.s32.totalorder %s2785_s9, 3  ;;  %p2308_p9 = por %p212_p5, %p60_p6 }
  0x34   : > { %p1564_p4 = scmp.ge.s32.totalorder %s2097_s25, 1  ;;  %p2316_p7 = por %p314_p8, %p53_p1 }
  0x35   : > { %s2786_s27 = scalar_select %p2308_p9, 1, 0 }
  0x36   : > { %s2788_s28 = scalar_select %p2316_p7, 1, 0 }
  0x37   : > { %2787 = sst [smem:[#allocation29_spill]] %s2786_s27  ;;  %p2790_p12 = scmp.ne.s32.totalorder %s2073_s19, %s2069_s18 }
  0x38   : > { %2789 = sst [smem:[#allocation30_spill]] %s2788_s28  ;;  %p327_p13 = scmp.lt.s32.totalorder %s2097_s25, 5 }
  0x39   : > { %p2323_p2 = por %p320_p10, %p2790_p12  ;;  %s2099_s30 = smov [#allocation6]  }
  0x3a   : > { %p2328_p0 = pnand %p1564_p4, %p327_p13  ;;  %s339_s12 = sshll.u32 %s2099_s30, 4  ;;  %s340_s12 = int_to_ptr.vmem [resolvable:$true] %s339_s12 }
  0x3b   : > { %s2791_s29 = scalar_select %p2323_p2, 1, 0 }
  0x3c   : > { %p1708_p5 = pneg %p2328_p0  ;;  %s1886_s9 = scalar_lea.vmem %s340_s12, 1024 }
  0x3d   : > { %2792 = sst [smem:[#allocation31_spill]] %s2791_s29  ;;  %p1887_p7 = scmp.ne.s32.totalorder %s340_s12, %s1886_s9 }
  0x3e   : > { %p1709_p1 = pnand %p1708_p5, %p60_p6  ;;  %p1894_p9 = scmp.lt.s32.totalorder %s340_s12, %s340_s12 }
  0x3f   : > { %p1895_p2 = scmp.lt.s32.totalorder %s1886_s9, %s1886_s9 }
  0x40   : > { %p1877_p8 = pneg %p1709_p1 }
  0x41   : > { %p1896_p11 = por %p1895_p2, %p1894_p9 }
  0x42   : > { %p1889_p10 = pnand %p1887_p7, %p1877_p8 }
  0x44   : > { %p1890_p12 = pneg %p1889_p10 }
  0x46   : > { %p1897_p4 = pnand %p1896_p11, %p1890_p12 }
  0x48   : > { %1900 = shalt.err (!%p1897_p4)
}
  0x49   : > { %s2100_s7 = smov 128   ;;  %s2101_s8 = smov 8  }
  0x4a   : > { %s2794_s1 = sld [smem:[#allocation33_spill]]  ;;  %p1566_p13 = scmp.ge.s32.totalorder %s2097_s25, 4 }
  0x4b   : > { %s353_s30 = sand.u32 (!%p1566_p13), 1, %s2097_s25   ;;  %s355_s18 = sand.u32 (!%p1566_p13), 1, %s2077_s20  }
  0x4c   : > { %349 = sbr.rel (%p1566_p13) target bundleno = 143 (0x8f), region = 20  ;;  %s1567_s28 = sshll.u32 (!%p1566_p13), %s355_s18, 6 }
  0x4d   : > { %s1568_s9 = sshll.u32 (!%p1566_p13), %s2093_s24, 7  ;;  %s2795_s0 = sld [smem:[#allocation32_spill]] (!%p1566_p13) }
  0x4e   : > { %s357_s14 = scalar_lea.vmem (!%p1566_p13), [#allocation3], %s1567_s28  ;;  %s2346_s4 = scalar_lea.sflag (!%p1566_p13), [#allocation4], %s353_s30 }
  0x4f   : > { %s363_s16 = sshll.u32 (!%p1566_p13), %s357_s14, 4  ;;  %s364_s16 = int_to_ptr.vmem [resolvable:$true] %s363_s16 }
  0x50   : > { %1711 = dma.hbm_to_vmem [thread:$0]  (!%p1709_p1), %s2794_s1, 1024, %s340_s12, [#allocation7], %s2100_s7, %s2100_s7, %s2101_s8  }
  0x51   : > { %s1913_s7 = scalar_lea.vmem %s364_s16, 1024  ;;  %s2102_s8 = smov [#allocation3]  }
  0x52   : > { %p1914_p7 = scmp.ne.s32.totalorder %s364_s16, %s1913_s7  ;;  %s1917_s29 = sshll.u32 %s2102_s8, 4  ;;  %s1918_s29 = int_to_ptr.vmem [resolvable:$false] %s1917_s29 }
  0x53   : > { %s362_s27 = scalar_lea.hbm %s2795_s0, %s1568_s9  ;;  %s1919_s12 = scalar_lea.vmem %s1918_s29, 2048 }
  0x54   : > { %p1915_p11 = pnand %p1914_p7, %p2252_p3  ;;  %p1920_p2 = scmp.lt.s32.totalorder %s364_s16, %s1918_s29 }
  0x55   : > { %p1921_p5 = scmp.lt.s32.totalorder %s1919_s12, %s1913_s7 }
  0x56   : > { %p1916_p9 = pneg %p1915_p11 }
  0x57   : > { %p1922_p1 = por %p1921_p5, %p1920_p2 }
  0x59   : > { %p1923_p8 = pnand %p1922_p1, %p1916_p9 }
  0x5b   : > { %1926 = shalt.err (!%p1923_p8)
}
  0x5c   : > { %s2103_s18 = smov 256   ;;  %s2104_s14 = smov 128  }
  0x5d   : > { %s2105_s21 = smov 8   ;;  %p2796_p10 = scmp.ne.s32.totalorder %s2782_s5, 0 }
  0x5e   : > { %1700 = dma.hbm_to_vmem [thread:$0]  (%p2252_p3), %s362_s27, 1024, %s364_s16, %s2346_s4, %s2103_s18, %s2104_s14, %s2105_s21  }
  0x5f   : > { %372 = sbr.rel (!%p2796_p10) target bundleno = 126 (0x7e), region = 28  ;;  %s374_s22 = sand.u32 (%p2796_p10), 1, %s2065_s17  }
  0x60   : > { %s1570_s28 = sshll.u32 (%p2796_p10), %s2089_s23, 2  ;;  %s1569_s30 = sshll.u32 (%p2796_p10), %s374_s22, 7 }
  0x61   : > { %s2797_s2 = sld [smem:[#allocation34_spill]] (%p2796_p10)  ;;  %s2365_s5 = scalar_lea.vmem (%p2796_p10), [#allocation8], %s1569_s30 }
  0x67   : > { %s2361_s8 = scalar_lea.vmem %s2797_s2, %s1570_s28 }
  0x68   : > { %v395_v0 = vld [vmem:[%s2361_s8] sm:$0xf]  ;;  %v397_v1 = vld [vmem:[%s2361_s8 + $0x8] sm:$0xf]  ;;  %v399_v2 = vld [vmem:[%s2361_s8 + $0x10] sm:$0xf] }
  0x69   : > { %396 = vst [vmem:[%s2365_s5] sm:$0xf] %v395_v0  ;;  %398 = vst [vmem:[%s2365_s5 + $0x4] sm:$0xf] %v397_v1  ;;  %v401_v3 = vld [vmem:[%s2361_s8 + $0x18] sm:$0xf] }
  0x6a   : > { %v403_v4 = vld [vmem:[%s2361_s8 + $0x20] sm:$0xf]  ;;  %400 = vst [vmem:[%s2365_s5 + $0x8] sm:$0xf] %v399_v2  ;;  %402 = vst [vmem:[%s2365_s5 + $0xc] sm:$0xf] %v401_v3 }
  0x6b   : > { %404 = vst [vmem:[%s2365_s5 + $0x10] sm:$0xf] %v403_v4  ;;  %v405_v5 = vld [vmem:[%s2361_s8 + $0x28] sm:$0xf]  ;;  %v407_v6 = vld [vmem:[%s2361_s8 + $0x30] sm:$0xf] }
  0x6c   : > { %v409_v7 = vld [vmem:[%s2361_s8 + $0x38] sm:$0xf]  ;;  %406 = vst [vmem:[%s2365_s5 + $0x14] sm:$0xf] %v405_v5  ;;  %408 = vst [vmem:[%s2365_s5 + $0x18] sm:$0xf] %v407_v6 }
  0x6d   : > { %410 = vst [vmem:[%s2365_s5 + $0x1c] sm:$0xf] %v409_v7  ;;  %v411_v8 = vld [vmem:[%s2361_s8 + $0x40] sm:$0xf]  ;;  %v413_v9 = vld [vmem:[%s2361_s8 + $0x48] sm:$0xf] }
  0x6e   : > { %v415_v10 = vld [vmem:[%s2361_s8 + $0x50] sm:$0xf]  ;;  %412 = vst [vmem:[%s2365_s5 + $0x20] sm:$0xf] %v411_v8  ;;  %414 = vst [vmem:[%s2365_s5 + $0x24] sm:$0xf] %v413_v9 }
  0x6f   : > { %416 = vst [vmem:[%s2365_s5 + $0x28] sm:$0xf] %v415_v10  ;;  %v417_v11 = vld [vmem:[%s2361_s8 + $0x58] sm:$0xf]  ;;  %v419_v12 = vld [vmem:[%s2361_s8 + $0x60] sm:$0xf] }
  0x70   : > { %v421_v13 = vld [vmem:[%s2361_s8 + $0x68] sm:$0xf]  ;;  %418 = vst [vmem:[%s2365_s5 + $0x2c] sm:$0xf] %v417_v11  ;;  %420 = vst [vmem:[%s2365_s5 + $0x30] sm:$0xf] %v419_v12 }
  0x71   : > { %422 = vst [vmem:[%s2365_s5 + $0x34] sm:$0xf] %v421_v13  ;;  %v423_v14 = vld [vmem:[%s2361_s8 + $0x70] sm:$0xf]  ;;  %v425_v15 = vld [vmem:[%s2361_s8 + $0x78] sm:$0xf] }
  0x72   : > { %v427_v16 = vld [vmem:[%s2361_s8 + $0x80] sm:$0xf]  ;;  %424 = vst [vmem:[%s2365_s5 + $0x38] sm:$0xf] %v423_v14  ;;  %426 = vst [vmem:[%s2365_s5 + $0x3c] sm:$0xf] %v425_v15 }
  0x73   : > { %428 = vst [vmem:[%s2365_s5 + $0x40] sm:$0xf] %v427_v16  ;;  %v429_v17 = vld [vmem:[%s2361_s8 + $0x88] sm:$0xf]  ;;  %v431_v18 = vld [vmem:[%s2361_s8 + $0x90] sm:$0xf] }
  0x74   : > { %v433_v19 = vld [vmem:[%s2361_s8 + $0x98] sm:$0xf]  ;;  %430 = vst [vmem:[%s2365_s5 + $0x44] sm:$0xf] %v429_v17  ;;  %432 = vst [vmem:[%s2365_s5 + $0x48] sm:$0xf] %v431_v18 }
  0x75   : > { %434 = vst [vmem:[%s2365_s5 + $0x4c] sm:$0xf] %v433_v19  ;;  %v435_v20 = vld [vmem:[%s2361_s8 + $0xa0] sm:$0xf]  ;;  %v437_v21 = vld [vmem:[%s2361_s8 + $0xa8] sm:$0xf] }
  0x76   : > { %v439_v22 = vld [vmem:[%s2361_s8 + $0xb0] sm:$0xf]  ;;  %436 = vst [vmem:[%s2365_s5 + $0x50] sm:$0xf] %v435_v20  ;;  %438 = vst [vmem:[%s2365_s5 + $0x54] sm:$0xf] %v437_v21 }
  0x77   : > { %440 = vst [vmem:[%s2365_s5 + $0x58] sm:$0xf] %v439_v22  ;;  %v441_v23 = vld [vmem:[%s2361_s8 + $0xb8] sm:$0xf]  ;;  %v443_v24 = vld [vmem:[%s2361_s8 + $0xc0] sm:$0xf] }
  0x78   : > { %v445_v25 = vld [vmem:[%s2361_s8 + $0xc8] sm:$0xf]  ;;  %442 = vst [vmem:[%s2365_s5 + $0x5c] sm:$0xf] %v441_v23  ;;  %444 = vst [vmem:[%s2365_s5 + $0x60] sm:$0xf] %v443_v24 }
  0x79   : > { %446 = vst [vmem:[%s2365_s5 + $0x64] sm:$0xf] %v445_v25  ;;  %v447_v26 = vld [vmem:[%s2361_s8 + $0xd0] sm:$0xf]  ;;  %v449_v27 = vld [vmem:[%s2361_s8 + $0xd8] sm:$0xf] }
  0x7a   : > { %v451_v28 = vld [vmem:[%s2361_s8 + $0xe0] sm:$0xf]  ;;  %448 = vst [vmem:[%s2365_s5 + $0x68] sm:$0xf] %v447_v26  ;;  %450 = vst [vmem:[%s2365_s5 + $0x6c] sm:$0xf] %v449_v27 }
  0x7b   : > { %452 = vst [vmem:[%s2365_s5 + $0x70] sm:$0xf] %v451_v28  ;;  %v453_v29 = vld [vmem:[%s2361_s8 + $0xe8] sm:$0xf]  ;;  %v455_v30 = vld [vmem:[%s2361_s8 + $0xf0] sm:$0xf] }
  0x7c   : > { %v457_v31 = vld [vmem:[%s2361_s8 + $0xf8] sm:$0xf]  ;;  %454 = vst [vmem:[%s2365_s5 + $0x74] sm:$0xf] %v453_v29  ;;  %456 = vst [vmem:[%s2365_s5 + $0x78] sm:$0xf] %v455_v30 }
  0x7d   : > { %458 = vst [vmem:[%s2365_s5 + $0x7c] sm:$0xf] %v457_v31 }
  0x7e PF: > { %s567_s16 = sand.u32 1, %s2057_s15   ;;  %s1621_s11 = sshll.u32 %s2089_s23, 5 }
  0x7f   : > { %s1571_s27 = sshll.u32 %s567_s16, 6  ;;  %s575_s29 = sadd.s32 %s2093_s24, %s1621_s11 }
  0x80   : > { %s1574_s12 = sshll.u32 %s575_s29, 6  ;;  %s2798_s6 = sld [smem:[#allocation38_spill]] }
  0x81   : > { %s569_s28 = scalar_lea.vmem [#allocation9], %s1571_s27  ;;  %p2799_p12 = scmp.ne.s32.totalorder %s2784_s3, 0 }
  0x82   : > { %s578_s30 = sshll.u32 %s569_s28, 4  ;;  %s2106_s7 = smov [#allocation9]   ;;  %s579_s30 = int_to_ptr.vmem [resolvable:$true] %s578_s30 }
  0x83   : > { %s1939_s9 = scalar_lea.vmem %s579_s30, 1024  ;;  %s1943_s8 = sshll.u32 %s2106_s7, 4  ;;  %s1944_s8 = int_to_ptr.vmem [resolvable:$false] %s1943_s8 }
  0x84   : > { %p1940_p3 = scmp.ne.s32.totalorder %s579_s30, %s1939_s9  ;;  %s1945_s5 = scalar_lea.vmem %s1944_s8, 2048 }
  0x85   : > { %p1946_p7 = scmp.lt.s32.totalorder %s579_s30, %s1944_s8  ;;  %p1947_p11 = scmp.lt.s32.totalorder %s1945_s5, %s1939_s9 }
  0x86   : > { %s577_s22 = scalar_lea.hbm %s2798_s6, %s1574_s12  ;;  %p1941_p4 = pnand %p1940_p3, %p2799_p12 }
  0x87   : > { %p1948_p9 = por %p1947_p11, %p1946_p7 }
  0x88   : > { %p1942_p13 = pneg %p1941_p4 }
  0x8a   : > { %p1949_p2 = pnand %p1948_p9, %p1942_p13 }
  0x8c   : > { %1952 = shalt.err (!%p1949_p2)
}
  0x8d   : > { %s2107_s16 = smov 64   ;;  %s2108_s11 = smov 4  }
  0x8e   : > { %1701 = dma.hbm_to_vmem [thread:$0]  (%p2799_p12), %s577_s22, 1024, %s579_s30, %s2346_s4, %s2104_s14, %s2107_s16, %s2108_s11  }
  0x8f PF: > { %608 = sbr.rel (%p2328_p0) target bundleno = 858 (0x35a), region = 97  ;;  %s610_s27 = sand.u32 (!%p2328_p0), 1, %s2235_s26  }
  0x90   : > { %s2751_s29 = sand.u32 (!%p2328_p0), 1, %s2073_s19   ;;  %s611_s18 = scalar_lea.sflag (!%p2328_p0), [#allocation4], %s610_s27 }
  0x91   : > { %s1576_s12 = sshll.u32 (!%p2328_p0), %s2751_s29, 6  ;;  %p2800_p5 = scmp.ne.s32.totalorder (!%p2328_p0), %s2779_s10, 0 }
  0x92   : > { %s2447_s21 = scalar_lea.vmem (!%p2328_p0), [#allocation3], %s1576_s12 }
  0x94   : > { %2032 = dma.done.wait (%p2800_p5), %s611_s18, 1024  }
  0x95   : > { %2034 = vsyncadd (%p2800_p5), %s611_s18, 4294966272 }
  0x96   : > { %2036 = dma.done.wait (%p60_p6), [#allocation7], 1024  }
  0x97   : > { %2038 = vsyncadd (%p60_p6), [#allocation7], 4294966272  ;;  %s2801_s3 = sld [smem:[#allocation16_spill]] }
  0x98   : > { %s2802_s13 = sld [smem:[#allocation15_spill]] }
  0x99   : > { %s2803_s4 = sld [smem:[#allocation29_spill]] }
  0x9d   : > { %s624_s14 = sand.u32 1, %s2801_s3  }
  0x9e   : > { %s632_s22 = sand.u32 1, %s2802_s13   ;;  %s1578_s28 = sshll.u32 %s624_s14, 7 }
  0x9f   : > { %s1579_s30 = sshll.u32 %s632_s22, 6  ;;  %s2459_s9 = scalar_lea.vmem [#allocation8], %s1578_s28 }
  0xa0   : > { %s2461_s7 = scalar_lea.vmem [#allocation9], %s1579_s30  ;;  %p2804_p0 = scmp.ne.s32.totalorder %s2803_s4, 0 }
  0xa2   : > { %2040 = dma.done.wait (%p2804_p0), %s611_s18, 1024  }
  0xa3   : > { %2042 = vsyncadd (%p2804_p0), %s611_s18, 4294966272  ;;  %s2805_s10 = sld [smem:[#allocation20_spill]]  ;;  %s2499_s27 = scalar_lea.vmem [#allocation10], %s1576_s12 }
  0xa4   : > { %s2806_s8 = sld [smem:[#allocation21_spill]] }
  0xa5   : > { %s2808_s13 = sld [smem:[#allocation36_spill]] }
  0xa6   : > { %s2809_s28 = sld [smem:[#allocation37_spill]] }
  0xa7   : > { %s2810_s1 = sld [smem:[#allocation39_spill]] }
  0xa8   : > { %s2811_s23 = sld [smem:[#allocation40_spill]] }
  0xa9   : > { %p698_p6 = scmp.lt.s32.totalorder %s2805_s10, 1  ;;  %s2812_s17 = sld [smem:[#allocation41_spill]] }
  0xaa   : > { %p708_p1 = scmp.lt.s32.totalorder %s2806_s8, 1  ;;  %p1581_p8 = scmp.ne.s32.totalorder %s2805_s10, 0 }
  0xab   : > { %s2470_s26 = scalar_select %p698_p6, %s2805_s10, 1 }
  0xac   : > { %s2854_s8 = smov (!%p708_p1, %s2806_s8), 1  ;;  %721 = sbr.rel (%p1581_p8) target bundleno = 182 (0xb6), region = 117 }
  0xad   : > { %s703_s4 = scalar_lea.vmem %s2808_s13, %s2470_s26  ;;  %s706_s30 = scalar_lea.vmem %s2809_s28, %s2470_s26 }
  0xae   : > { %s710_s2 = scalar_lea.vmem %s2810_s1, %s2854_s8  ;;  %s713_s5 = scalar_lea.vmem %s2811_s23, %s2854_s8 }
  0xaf   : > { %s716_s11 = scalar_lea.vmem %s2812_s17, %s2854_s8 }
  0xb1   : > { %v2109_v32 = vmov 0.0  }
  0xb2   : > { %722 = vst [vmem:[#allocation2 + $0x30] sm:$0xff] %v2109_v32  ;;  %723 = vst [vmem:[#allocation2] sm:$0xff] %v2109_v32 }
  0xb3   : > { %724 = vst [vmem:[#allocation2 + $0x18] sm:$0xff] %v2109_v32  ;;  %725 = vst [vmem:[#allocation2 + $0x10] sm:$0xff] %v2109_v32 }
  0xb4   : > { %726 = vst [vmem:[#allocation2 + $0x8] sm:$0xff] %v2109_v32  ;;  %727 = vst [vmem:[#allocation2 + $0x20] sm:$0xff] %v2109_v32 }
  0xb5   : > { %728 = vst [vmem:[#allocation2 + $0x28] sm:$0xff] %v2109_v32  ;;  %729 = vst [vmem:[#allocation2 + $0x38] sm:$0xff] %v2109_v32 }
  0xb6 PF: > { %v1835_v33 = vld [vmem:[%s2459_s9 + $0x78] sm:$0xff]   ;;  %v1837_v35 = vld [vmem:[%s2459_s9 + $0x70] sm:$0xff]   ;;  %v1839_v37 = vld [vmem:[%s2459_s9 + $0x68] sm:$0xff]   ;;  %s2813_s6 = sld [smem:[#allocation35_spill]] }
  0xb7   : > { %v1836_v34 = vld [vmem:[%s2459_s9 + $0x38] sm:$0xff]   ;;  %1622 = vmatprep.subr.bf16.mxu0 %v1835_v33  ;;  %v1838_v36 = vld [vmem:[%s2459_s9 + $0x30] sm:$0xff]   ;;  %v1840_v38 = vld [vmem:[%s2459_s9 + $0x28] sm:$0xff]  }
  0xb8   : > { %1623 = vmatpush3.bf16.msra.mxu0 %v1836_v34  ;;  %v1841_v39 = vld [vmem:[%s2459_s9 + $0x60] sm:$0xff]   ;;  %v1843_v41 = vld [vmem:[%s2459_s9 + $0x58] sm:$0xff]   ;;  %v1845_v43 = vld [vmem:[%s2459_s9 + $0x50] sm:$0xff]  }
  0xb9   : > { %1624 = vmatprep.subr.bf16.mxu0 %v1837_v35  ;;  %v1842_v40 = vld [vmem:[%s2459_s9 + $0x20] sm:$0xff]   ;;  %v1844_v42 = vld [vmem:[%s2459_s9 + $0x18] sm:$0xff]   ;;  %v1846_v45 = vld [vmem:[%s2459_s9 + $0x10] sm:$0xff]  }
  0xba   : > { %v1853_v44 = vld [vmem:[#allocation6 + $0x4] ss:$8 sps:$4 sm:$0xff]   ;;  %v1851_v50 = vld [vmem:[#allocation6] ss:$8 sps:$4 sm:$0xff]   ;;  %v1854_v51 = vld [vmem:[#allocation6 + $0x14] ss:$8 sps:$4 sm:$0xff]  }
  0xbb   : > { %945 = vmatprep.mubr.bf16.mxu0 %v1853_v44  ;;  %v1847_v46 = vld [vmem:[%s2459_s9 + $0x48] sm:$0xff]   ;;  %v1849_v48 = vld [vmem:[%s2459_s9 + $0x40] sm:$0xff]   ;;  %v1856_v52 = vld [vmem:[#allocation6 + $0x10] ss:$8 sps:$4 sm:$0xff]  }
  0xbc   : > { %1625 = vmatpush3.bf16.msra.mxu0 %v1838_v36  ;;  %v1848_v47 = vld [vmem:[%s2459_s9 + $0x8] sm:$0xff]   ;;  %v1850_v49 = vld [vmem:[%s2459_s9] sm:$0xff]   ;;  %v1860_v55 = vld [vmem:[#allocation6 + $0x34] ss:$8 sps:$4 sm:$0xff]   ;;  %s2814_s17 = scalar_lea.vmem %s2813_s6, %s2470_s26 }
  0xbd   : > { %1626 = vmatprep.subr.bf16.mxu0 %v1839_v37  ;;  %v1857_v53 = vld [vmem:[#allocation6 + $0x24] ss:$8 sps:$4 sm:$0xff]   ;;  %v1859_v54 = vld [vmem:[#allocation6 + $0x20] ss:$8 sps:$4 sm:$0xff]   ;;  %v1862_v56 = vld [vmem:[#allocation6 + $0x30] ss:$8 sps:$4 sm:$0xff]  }
  0xbe   : > { %v1863_v57 = vld [vmem:[%s2461_s7 + $0x38] sm:$0xff]   ;;  %v1864_v58 = vld [vmem:[%s2461_s7 + $0x30] sm:$0xff]   ;;  %v1865_v59 = vld [vmem:[%s2461_s7 + $0x28] sm:$0xff]  }
  0xbf   : > { %1674 = vmatprep.subr.bf16.mxu1 %v1863_v57  ;;  %v1866_v60 = vld [vmem:[%s2461_s7 + $0x20] sm:$0xff]   ;;  %v1867_v61 = vld [vmem:[%s2461_s7 + $0x18] sm:$0xff]   ;;  %v1868_v62 = vld [vmem:[%s2461_s7 + $0x10] sm:$0xff]  }
  0xc0   : > { %1627 = vmatpush3.bf16.msra.mxu0 %v1840_v38  ;;  %1675 = vmatpush3.bf16.msra.mxu1 %v1863_v57  ;;  %v1869_v63 = vld [vmem:[%s2461_s7 + $0x8] sm:$0xff]   ;;  %v1870_v0 = vld [vmem:[%s2461_s7] sm:$0xff]   ;;  %s2817_s7 = sld [smem:[#allocation20_spill]] }
  0xc1   : > { %1628 = vmatprep.subr.bf16.mxu0 %v1841_v39  ;;  %1676 = vmatprep.subr.bf16.mxu1 %v1864_v58  ;;  %v1582_v12 = vld [vmem:[%s2814_s17] ss:$0 sm:$0xff] }
  0xc4   : > { %1629 = vmatpush3.bf16.msra.mxu0 %v1842_v40  ;;  %1677 = vmatpush3.bf16.msra.mxu1 %v1864_v58 }
  0xc5   : > { %1630 = vmatprep.subr.bf16.mxu0 %v1843_v41  ;;  %1678 = vmatprep.subr.bf16.mxu1 %v1865_v59 }
  0xc6   : > { %p1615_p10 = scmp.ne.s32.totalorder %s2817_s7, 1 }
  0xc8   : > { %1631 = vmatpush3.bf16.msra.mxu0 %v1844_v42  ;;  %1679 = vmatpush3.bf16.msra.mxu1 %v1865_v59 }
  0xc9   : > { %1632 = vmatprep.subr.bf16.mxu0 %v1845_v43  ;;  %1680 = vmatprep.subr.bf16.mxu1 %v1866_v60 }
  0xcc   : > { %1633 = vmatpush3.bf16.msra.mxu0 %v1846_v45  ;;  %1681 = vmatpush3.bf16.msra.mxu1 %v1866_v60 }
  0xcd   : > { %1634 = vmatprep.subr.bf16.mxu0 %v1847_v46  ;;  %1682 = vmatprep.subr.bf16.mxu1 %v1867_v61 }
  0xd0   : > { %1635 = vmatpush3.bf16.msra.mxu0 %v1848_v47  ;;  %1683 = vmatpush3.bf16.msra.mxu1 %v1867_v61 }
  0xd1   : > { %1636 = vmatprep.subr.bf16.mxu0 %v1849_v48  ;;  %1684 = vmatprep.subr.bf16.mxu1 %v1868_v62 }
  0xd4   : > { %1637 = vmatpush3.bf16.msra.mxu0 %v1850_v49  ;;  %1685 = vmatpush3.bf16.msra.mxu1 %v1868_v62 }
  0xd5   : > { %1686 = vmatprep.subr.bf16.mxu1 %v1869_v63 }
  0xd7   : > { %946 = vmatmul.mubr.bf16.vlgmr.msra.gmra.mxu0 %v1851_v50 }
  0xd8   : > { %953 = vmatprep.mubr.bf16.mxu0 %v1854_v51  ;;  %1687 = vmatpush3.bf16.msra.mxu1 %v1869_v63 }
  0xd9   : > { %1688 = vmatprep.subr.bf16.mxu1 %v1870_v0 }
  0xdc   : > { %1689 = vmatpush3.bf16.msra.mxu1 %v1870_v0 }
  0xdf   : > { %954 = vmatmul.mubr.bf16.gmra.mxu0 %v1856_v52 }
  0xe0   : > { %961 = vmatprep.mubr.bf16.mxu0 %v1857_v53 }
  0xe7   : > { %962 = vmatmul.mubr.bf16.gmra.mxu0 %v1859_v54 }
  0xe8   : > { %969 = vmatprep.mubr.bf16.mxu0 %v1860_v55 }
  0xef   : > { %970 = vmatmul.mubr.bf16.gmra.mxu0 %v1862_v56 }
 0x197   : > { %v1638_v1 = vpop.f32.mrf.mxu0 }
 0x199   : > { %v1639_v2 = vpop.f32.mrf.mxu0 }
 0x19a   : > { %v1640_v10 = vadd.f32 %v1639_v2, %v1638_v1 }
 0x19b   : > { %v1641_v3 = vpop.f32.mrf.mxu0 }
 0x19c   : > { %v948_v17 = vadd.f32 %v1640_v10, %v1582_v12 }
 0x19d   : > { %v1642_v4 = vpop.f32.mrf.mxu0 }
 0x19e   : > { %v1643_v8 = vadd.f32 %v1642_v4, %v1641_v3  ;;  %v2533_v24 = vmax.f32 %v948_v17, 0.0 }
 0x19f   : > { %v1644_v5 = vpop.f32.mrf.mxu0 }
 0x1a0   : > { %v951_v14 = vadd.f32 %v1643_v8, %v1582_v12 }
 0x1a1   : > { %v1645_v6 = vpop.f32.mrf.mxu0 }
 0x1a2   : > { %v1646_v11 = vadd.f32 %v1645_v6, %v1644_v5  ;;  %v2531_v21 = vmax.f32 %v951_v14, 0.0 }
 0x1a3   : > { %v1647_v7 = vpop.f32.mrf.mxu0 }
 0x1a4   : > { %v956_v18 = vadd.f32 %v1646_v11, %v1582_v12  ;;  %v988_v29 = vadd.f32 %v2531_v21, %v2533_v24 }
 0x1a5   : > { %v1648_v9 = vpop.f32.mrf.mxu0 }
 0x1a6   : > { %v1649_v15 = vadd.f32 %v1648_v9, %v1647_v7  ;;  %v2535_v25 = vmax.f32 %v956_v18, 0.0 }
 0x1a7   : > { %v1650_v13 = vpop.f32.mrf.mxu0 }
 0x1a8   : > { %v959_v22 = vadd.f32 %v1649_v15, %v1582_v12  ;;  %v989_v33 = vadd.f32 %v988_v29, %v2535_v25 }
 0x1a9   : > { %v1651_v16 = vpop.f32.mrf.mxu0 }
 0x1aa   : > { %v1652_v19 = vadd.f32 %v1651_v16, %v1650_v13  ;;  %v2539_v30 = vmax.f32 %v959_v22, 0.0 }
 0x1ab   : > { %v1653_v20 = vpop.f32.mrf.mxu0 }
 0x1ac   : > { %v964_v26 = vadd.f32 %v1652_v19, %v1582_v12  ;;  %v990_v37 = vadd.f32 %v989_v33, %v2539_v30  ;;  %v987_v33 = vld [vmem:[%s706_s30] sm:$0x1] }
 0x1ad   : > { %v1654_v23 = vpop.f32.mrf.mxu0 }
 0x1ae   : > { %v1655_v27 = vadd.f32 %v1654_v23, %v1653_v20  ;;  %v2542_v34 = vmax.f32 %v964_v26, 0.0  ;;  %v1039_v26 = vlaneseq }
 0x1af   : > { %v1656_v28 = vpop.f32.mrf.mxu0 }
 0x1b0   : > { %v967_v31 = vadd.f32 %v1655_v27, %v1582_v12  ;;  %v991_v41 = vadd.f32 %v990_v37, %v2542_v34  ;;  %v1040_v27 = vshrl.u32 %v1039_v26, 7 }
 0x1b1   : > { %v1657_v32 = vpop.f32.mrf.mxu0 }
 0x1b2   : > { %v1658_v35 = vadd.f32 %v1657_v32, %v1656_v28  ;;  %v2545_v38 = vmax.f32 %v967_v31, 0.0  ;;  %v986_v28 = vld [vmem:[%s703_s4] sm:$0x1]  ;;  %v2568_v29 = vsub.s32 0, %v1040_v27 }
 0x1b3   : > { %v1659_v36 = vpop.f32.mrf.mxu0 }
 0x1b4   : > { %v972_v39 = vadd.f32 %v1658_v35, %v1582_v12  ;;  %v992_v44 = vadd.f32 %v991_v41, %v2545_v38 }
 0x1b5   : > { %v1660_v40 = vpop.f32.mrf.mxu0 }
 0x1b6   : > { %v2548_v42 = vmax.f32 %v972_v39, 0.0  ;;  %v1661_v43 = vadd.f32 %v1660_v40, %v1659_v36 }
 0x1b8   : > { %v975_v45 = vadd.f32 %v1661_v43, %v1582_v12  ;;  %v993_v46 = vadd.f32 %v992_v44, %v2548_v42 }
 0x1ba   : > { %v2552_v47 = vmax.f32 %v975_v45, 0.0 }
 0x1bc   : > { %v994_v48 = vadd.f32 %v993_v46, %v2552_v47 }
 0x1be   : > { %v995_v49 = vrot.slane %v994_v48, 4 }
 0x1c0   : > { %v996_v50 = vadd.f32 %v995_v49, %v994_v48 }
 0x1c2   : > { %v997_v51 = vrot.slane %v996_v50, 2 }
 0x1c4   : > { %v998_v52 = vadd.f32 %v997_v51, %v996_v50 }
 0x1c6   : > { %v999_v53 = vrot.slane %v998_v52, 1 }
 0x1c8   : > { %v1000_v54 = vadd.f32 %v999_v53, %v998_v52 }
 0x1ca   : > { %v1002_v55 = vmul.f32 0.015625, %v1000_v54 }
 0x1cc   : > { %v1003_v56 = vsub.f32 %v2533_v24, %v1002_v55  ;;  %v1004_v57 = vsub.f32 %v2531_v21, %v1002_v55  ;;  %v1005_v58 = vsub.f32 %v2535_v25, %v1002_v55  ;;  %v1006_v59 = vsub.f32 %v2539_v30, %v1002_v55 }
 0x1cd   : > { %v1007_v62 = vsub.f32 %v2542_v34, %v1002_v55  ;;  %v1008_v1 = vsub.f32 %v2545_v38, %v1002_v55  ;;  %v1009_v4 = vsub.f32 %v2548_v42, %v1002_v55  ;;  %v1010_v7 = vsub.f32 %v2552_v47, %v1002_v55 }
 0x1ce   : > { %v1011_v60 = vmul.f32 %v1003_v56, %v1003_v56  ;;  %v1012_v61 = vmul.f32 %v1004_v57, %v1004_v57  ;;  %v1013_v63 = vmul.f32 %v1005_v58, %v1005_v58  ;;  %v1014_v2 = vmul.f32 %v1006_v59, %v1006_v59  ;;  %v1066_v58 = vld [vmem:[#allocation2 + $0x30] sm:$0xff] }
 0x1cf   : > { %v1015_v5 = vmul.f32 %v1007_v62, %v1007_v62  ;;  %v1016_v8 = vmul.f32 %v1008_v1, %v1008_v1  ;;  %v1017_v10 = vmul.f32 %v1009_v4, %v1009_v4  ;;  %v1018_v12 = vmul.f32 %v1010_v7, %v1010_v7  ;;  %v1070_v4 = vld [vmem:[#allocation2 + $0x8] sm:$0xff]  ;;  %v1073_v7 = vld [vmem:[#allocation2 + $0x38] sm:$0xff] }
 0x1d0   : > { %v1019_v0 = vadd.f32 %v1012_v61, %v1011_v60  ;;  %v1069_v61 = vld [vmem:[#allocation2 + $0x10] sm:$0xff] }
 0x1d2   : > { %v1020_v3 = vadd.f32 %v1019_v0, %v1013_v63  ;;  %v1067_v0 = vld [vmem:[#allocation2] sm:$0xff] }
 0x1d4   : > { %v1021_v6 = vadd.f32 %v1020_v3, %v1014_v2  ;;  %v1072_v2 = vld [vmem:[#allocation2 + $0x28] sm:$0xff] }
 0x1d6   : > { %v1022_v9 = vadd.f32 %v1021_v6, %v1015_v5 }
 0x1d8   : > { %v1023_v11 = vadd.f32 %v1022_v9, %v1016_v8 }
 0x1da   : > { %v1024_v13 = vadd.f32 %v1023_v11, %v1017_v10  ;;  %v1071_v10 = vld [vmem:[#allocation2 + $0x20] sm:$0xff] }
 0x1dc   : > { %v1025_v14 = vadd.f32 %v1024_v13, %v1018_v12 }
 0x1de   : > { %v1026_v15 = vrot.slane %v1025_v14, 4 }
 0x1e0   : > { %v1027_v16 = vadd.f32 %v1026_v15, %v1025_v14 }
 0x1e2   : > { %v1028_v17 = vrot.slane %v1027_v16, 2 }
 0x1e4   : > { %v1029_v18 = vadd.f32 %v1028_v17, %v1027_v16 }
 0x1e6   : > { %v1030_v19 = vrot.slane %v1029_v18, 1 }
 0x1e8   : > { %v1031_v20 = vadd.f32 %v1030_v19, %v1029_v18 }
 0x1ea   : > { %v1032_v22 = vmul.f32 0.015625, %v1031_v20 }
 0x1ec   : > { %v1033_v23 = vadd.f32 1e-05, %v1032_v22 }
 0x1ee   : > { %1871 = vrsqrt.f32 %v1033_v23 }
 0x1fb   : > { %v1872_v31 = vpop.eup %1871 }
 0x1fc   : > { %v1035_v32 = vmul.f32 %v1872_v31, %v986_v28 }
 0x1fe   : > { %v1036_v35 = vmul.f32 %v1035_v32, %v1002_v55  ;;  %v1042_v36 = vrot.slane %v1035_v32, %v2568_v29 }
 0x200   : > { %v1037_v37 = vsub.f32 %v987_v33, %v1036_v35  ;;  %v1044_v39 = vmul.f32 %v1042_v36, %v2533_v24  ;;  %v1045_v40 = vmul.f32 %v1042_v36, %v2531_v21  ;;  %v1046_v43 = vmul.f32 %v1042_v36, %v2535_v25 }
 0x201   : > { %v1047_v44 = vmul.f32 %v1042_v36, %v2539_v30  ;;  %v1048_v45 = vmul.f32 %v1042_v36, %v2542_v34  ;;  %v1049_v46 = vmul.f32 %v1042_v36, %v2545_v38  ;;  %v1051_v55 = vmul.f32 %v1042_v36, %v2552_v47  ;;  %v1068_v38 = vld [vmem:[#allocation2 + $0x18] sm:$0xff] }
 0x202   : > { %v1056_v41 = vrot.slane %v1037_v37, %v2568_v29  ;;  %v1050_v25 = vmul.f32 %v1042_v36, %v2548_v42 }
 0x204   : > { %v1058_v48 = vadd.f32 %v1056_v41, %v1044_v39  ;;  %v1059_v49 = vadd.f32 %v1056_v41, %v1045_v40  ;;  %v1060_v50 = vadd.f32 %v1056_v41, %v1046_v43  ;;  %v1061_v51 = vadd.f32 %v1056_v41, %v1047_v44 }
 0x205   : > { %v1062_v52 = vadd.f32 %v1056_v41, %v1048_v45  ;;  %v1063_v53 = vadd.f32 %v1056_v41, %v1049_v46  ;;  %v1064_v30 = vadd.f32 %v1056_v41, %v1050_v25  ;;  %v1065_v34 = vadd.f32 %v1056_v41, %v1051_v55 }
 0x206   : > { %v1074_v54 = vpack.c.bf16 %v1059_v49, %v1058_v48  ;;  %v1075_v24 = vpack.c.bf16 %v1061_v51, %v1060_v50 }
 0x207   : > { %v1076_v21 = vpack.c.bf16 %v1063_v53, %v1062_v52  ;;  %v1077_v56 = vpack.c.bf16 %v1065_v34, %v1064_v30 }
 0x208   : > { %1690 = vmatprep.mubr.bf16.mxu1 %v1074_v54 }
 0x209   : > { %1691 = vmatmul.mubr.bf16.vlgmr.msra.gmra.mxu1 %v1075_v24 }
 0x20a   : > { %1694 = vmatprep.mubr.bf16.mxu1 %v1076_v21 }
 0x211   : > { %1695 = vmatmul.mubr.bf16.gmra.mxu1 %v1077_v56 }
 0x2c9   : > { %v1692_v57 = vpop.f32.mrf.mxu1 }
 0x2ca   : > { %v1209_v59 = vadd.f32 %v1692_v57, %v1068_v38 }
 0x2cb   : > { %v1176_v60 = vpop.f32.mrf.mxu1 }
 0x2cc   : > { %1217 = vst [vmem:[#allocation2 + $0x18] sm:$0xff] %v1209_v59  ;;  %v1207_v62 = vadd.f32 %v1176_v60, %v1066_v58 }
 0x2cd   : > { %v1693_v63 = vpop.f32.mrf.mxu1 }
 0x2ce   : > { %1215 = vst [vmem:[#allocation2 + $0x30] sm:$0xff] %v1207_v62  ;;  %v1210_v47 = vadd.f32 %v1693_v63, %v1069_v61 }
 0x2cf   : > { %v1179_v1 = vpop.f32.mrf.mxu1 }
 0x2d0   : > { %1218 = vst [vmem:[#allocation2 + $0x10] sm:$0xff] %v1210_v47  ;;  %v1208_v42 = vadd.f32 %v1179_v1, %v1067_v0 }
 0x2d1   : > { %v1696_v3 = vpop.f32.mrf.mxu1 }
 0x2d2   : > { %1216 = vst [vmem:[#allocation2] sm:$0xff] %v1208_v42  ;;  %v1213_v5 = vadd.f32 %v1696_v3, %v1072_v2 }
 0x2d3   : > { %v1192_v6 = vpop.f32.mrf.mxu1 }
 0x2d4   : > { %1221 = vst [vmem:[#allocation2 + $0x28] sm:$0xff] %v1213_v5  ;;  %v1211_v8 = vadd.f32 %v1192_v6, %v1070_v4 }
 0x2d5   : > { %v1697_v9 = vpop.f32.mrf.mxu1 }
 0x2d6   : > { %1219 = vst [vmem:[#allocation2 + $0x8] sm:$0xff] %v1211_v8  ;;  %v1214_v11 = vadd.f32 %v1697_v9, %v1073_v7  ;;  %1226 = sbr.rel (%p1615_p10) target bundleno = 829 (0x33d), region = 121 }
 0x2d7   : > { %v1195_v12 = vpop.f32.mrf.mxu1 }
 0x2d8   : > { %1222 = vst [vmem:[#allocation2 + $0x38] sm:$0xff] %v1214_v11  ;;  %v1212_v13 = vadd.f32 %v1195_v12, %v1071_v10 }
 0x2da   : > { %1220 = vst [vmem:[#allocation2 + $0x20] sm:$0xff] %v1212_v13 }
 0x2db   : > { %v1227_v14 = vld [vmem:[#allocation2 + $0x30] sm:$0xff]  ;;  %v1228_v15 = vld [vmem:[#allocation2] sm:$0xff]  ;;  %v1229_v16 = vld [vmem:[#allocation2 + $0x18] sm:$0xff] }
 0x2dc   : > { %v1230_v17 = vld [vmem:[#allocation2 + $0x10] sm:$0xff]  ;;  %v1616_v19 = vld [vmem:[%s710_s2] ss:$0 sm:$0xff]  ;;  %v1233_v35 = vld [vmem:[#allocation2 + $0x28] sm:$0xff] }
 0x2dd   : > { %v1231_v18 = vld [vmem:[#allocation2 + $0x8] sm:$0xff]  ;;  %v1242_v20 = vadd.f32 %v1616_v19, %v1227_v14  ;;  %v1243_v22 = vadd.f32 %v1616_v19, %v1228_v15  ;;  %v1244_v23 = vadd.f32 %v1616_v19, %v1229_v16  ;;  %v1245_v26 = vadd.f32 %v1616_v19, %v1230_v17 }
 0x2de   : > { %v1246_v28 = vadd.f32 %v1616_v19, %v1231_v18  ;;  %v1248_v41 = vadd.f32 %v1616_v19, %v1233_v35 }
 0x2df   : > { %v2591_v31 = vmax.f32 %v1242_v20, 0.0  ;;  %v2593_v32 = vmax.f32 %v1243_v22, 0.0  ;;  %v2595_v33 = vmax.f32 %v1244_v23, 0.0  ;;  %v2597_v37 = vmax.f32 %v1245_v26, 0.0  ;;  %v1234_v40 = vld [vmem:[#allocation2 + $0x38] sm:$0xff] }
 0x2e0   : > { %v1254_v43 = vmax.f32 %v1246_v28, 0.0  ;;  %v1249_v45 = vadd.f32 %v1616_v19, %v1234_v40  ;;  %v1256_v49 = vmax.f32 %v1248_v41, 0.0  ;;  %v1258_v22 = vld [vmem:[%s713_s5] sm:$0x1] }
 0x2e1   : > { %v1232_v27 = vld [vmem:[#allocation2 + $0x20] sm:$0xff]  ;;  %v1260_v39 = vadd.f32 %v2593_v32, %v2591_v31 }
 0x2e2   : > { %v1247_v36 = vadd.f32 %v1616_v19, %v1232_v27  ;;  %v1257_v51 = vmax.f32 %v1249_v45, 0.0  ;;  %v1259_v27 = vld [vmem:[%s716_s11] sm:$0x1] }
 0x2e3   : > { %v1261_v44 = vadd.f32 %v1260_v39, %v2595_v33 }
 0x2e4   : > { %v1255_v46 = vmax.f32 %v1247_v36, 0.0 }
 0x2e5   : > { %v1262_v48 = vadd.f32 %v1261_v44, %v2597_v37 }
 0x2e7   : > { %v1263_v50 = vadd.f32 %v1262_v48, %v1254_v43 }
 0x2e9   : > { %v1264_v52 = vadd.f32 %v1263_v50, %v1255_v46 }
 0x2eb   : > { %v1265_v53 = vadd.f32 %v1264_v52, %v1256_v49 }
 0x2ed   : > { %v1266_v54 = vadd.f32 %v1265_v53, %v1257_v51  ;;  %v1337_v53 = vld [vmem:[%s2447_s21] sm:$0xff] }
 0x2ef   : > { %v1267_v24 = vrot.slane %v1266_v54, 4 }
 0x2f1   : > { %v1268_v21 = vadd.f32 %v1267_v24, %v1266_v54  ;;  %v1338_v54 = vld [vmem:[%s2447_s21 + $0x8] sm:$0xff] }
 0x2f3   : > { %v1269_v55 = vrot.slane %v1268_v21, 2 }
 0x2f5   : > { %v1270_v25 = vadd.f32 %v1269_v55, %v1268_v21  ;;  %v1339_v21 = vld [vmem:[%s2447_s21 + $0x10] sm:$0xff]  ;;  %v1340_v55 = vld [vmem:[%s2447_s21 + $0x18] sm:$0xff] }
 0x2f7   : > { %v1271_v30 = vrot.slane %v1270_v25, 1 }
 0x2f9   : > { %v1272_v34 = vadd.f32 %v1271_v30, %v1270_v25 }
 0x2fb   : > { %v1273_v56 = vmul.f32 0.015625, %v1272_v34  ;;  %v1342_v34 = vld [vmem:[%s2447_s21 + $0x28] sm:$0xff] }
 0x2fd   : > { %v1274_v38 = vsub.f32 %v2591_v31, %v1273_v56  ;;  %v1275_v57 = vsub.f32 %v2593_v32, %v1273_v56  ;;  %v1276_v58 = vsub.f32 %v2595_v33, %v1273_v56  ;;  %v1277_v59 = vsub.f32 %v2597_v37, %v1273_v56 }
 0x2fe   : > { %v1278_v60 = vsub.f32 %v1254_v43, %v1273_v56  ;;  %v1279_v0 = vsub.f32 %v1255_v46, %v1273_v56  ;;  %v1280_v2 = vsub.f32 %v1256_v49, %v1273_v56  ;;  %v1281_v4 = vsub.f32 %v1257_v51, %v1273_v56 }
 0x2ff   : > { %v1282_v61 = vmul.f32 %v1274_v38, %v1274_v38  ;;  %v1283_v62 = vmul.f32 %v1275_v57, %v1275_v57  ;;  %v1284_v63 = vmul.f32 %v1276_v58, %v1276_v58  ;;  %v1285_v47 = vmul.f32 %v1277_v59, %v1277_v59 }
 0x300   : > { %v1286_v42 = vmul.f32 %v1278_v60, %v1278_v60  ;;  %v1287_v5 = vmul.f32 %v1279_v0, %v1279_v0  ;;  %v1288_v7 = vmul.f32 %v1280_v2, %v1280_v2  ;;  %v1289_v9 = vmul.f32 %v1281_v4, %v1281_v4 }
 0x301   : > { %v1290_v1 = vadd.f32 %v1283_v62, %v1282_v61 }
 0x303   : > { %v1291_v3 = vadd.f32 %v1290_v1, %v1284_v63 }
 0x305   : > { %v1292_v6 = vadd.f32 %v1291_v3, %v1285_v47 }
 0x307   : > { %v1293_v8 = vadd.f32 %v1292_v6, %v1286_v42 }
 0x309   : > { %v1294_v10 = vadd.f32 %v1293_v8, %v1287_v5 }
 0x30b   : > { %v1295_v11 = vadd.f32 %v1294_v10, %v1288_v7 }
 0x30d   : > { %v1296_v12 = vadd.f32 %v1295_v11, %v1289_v9 }
 0x30f   : > { %v1297_v13 = vrot.slane %v1296_v12, 4 }
 0x311   : > { %v1298_v14 = vadd.f32 %v1297_v13, %v1296_v12 }
 0x313   : > { %v1299_v15 = vrot.slane %v1298_v14, 2 }
 0x315   : > { %v1300_v16 = vadd.f32 %v1299_v15, %v1298_v14 }
 0x317   : > { %v1301_v17 = vrot.slane %v1300_v16, 1 }
 0x319   : > { %v1302_v18 = vadd.f32 %v1301_v17, %v1300_v16 }
 0x31b   : > { %v1303_v19 = vmul.f32 0.015625, %v1302_v18 }
 0x31d   : > { %v1304_v20 = vadd.f32 1e-05, %v1303_v19 }
 0x31f   : > { %1873 = vrsqrt.f32 %v1304_v20 }
 0x32c   : > { %v1874_v23 = vpop.eup %1873 }
 0x32d   : > { %v1306_v26 = vmul.f32 %v1874_v23, %v1258_v22 }
 0x32f   : > { %v1307_v28 = vmul.f32 %v1306_v26, %v1273_v56  ;;  %v1313_v35 = vrot.slane %v1306_v26, %v2568_v29 }
 0x331   : > { %v1308_v36 = vsub.f32 %v1259_v27, %v1307_v28  ;;  %v1315_v39 = vmul.f32 %v1313_v35, %v2591_v31  ;;  %v1316_v40 = vmul.f32 %v1313_v35, %v2593_v32  ;;  %v1317_v41 = vmul.f32 %v1313_v35, %v2595_v33  ;;  %v1341_v31 = vld [vmem:[%s2447_s21 + $0x20] sm:$0xff] }
 0x332   : > { %v1318_v44 = vmul.f32 %v1313_v35, %v2597_v37  ;;  %v1319_v45 = vmul.f32 %v1313_v35, %v1254_v43  ;;  %v1320_v48 = vmul.f32 %v1313_v35, %v1255_v46  ;;  %v1321_v50 = vmul.f32 %v1313_v35, %v1256_v49  ;;  %v1343_v37 = vld [vmem:[%s2447_s21 + $0x30] sm:$0xff]  ;;  %v1344_v43 = vld [vmem:[%s2447_s21 + $0x38] sm:$0xff] }
 0x333   : > { %v1327_v52 = vrot.slane %v1308_v36, %v2568_v29  ;;  %v1322_v24 = vmul.f32 %v1313_v35, %v1257_v51 }
 0x335   : > { %v1329_v25 = vadd.f32 %v1327_v52, %v1315_v39  ;;  %v1330_v32 = vadd.f32 %v1327_v52, %v1316_v40  ;;  %v1331_v30 = vadd.f32 %v1327_v52, %v1317_v41  ;;  %v1332_v33 = vadd.f32 %v1327_v52, %v1318_v44 }
 0x336   : > { %v1333_v46 = vadd.f32 %v1327_v52, %v1319_v45  ;;  %v1334_v29 = vadd.f32 %v1327_v52, %v1320_v48  ;;  %v1335_v49 = vadd.f32 %v1327_v52, %v1321_v50  ;;  %v1336_v51 = vadd.f32 %v1327_v52, %v1322_v24 }
 0x337   : > { %v1345_v56 = vadd.f32 %v1337_v53, %v1329_v25  ;;  %v1346_v38 = vadd.f32 %v1338_v54, %v1330_v32  ;;  %v1347_v57 = vadd.f32 %v1339_v21, %v1331_v30  ;;  %v1348_v58 = vadd.f32 %v1340_v55, %v1332_v33 }
 0x338   : > { %v1349_v59 = vadd.f32 %v1341_v31, %v1333_v46  ;;  %v1350_v60 = vadd.f32 %v1342_v34, %v1334_v29  ;;  %v1351_v61 = vadd.f32 %v1343_v37, %v1335_v49  ;;  %v1352_v62 = vadd.f32 %v1344_v43, %v1336_v51 }
 0x339   : > { %1353 = vst [vmem:[%s2499_s27] sm:$0xff] %v1345_v56  ;;  %1354 = vst [vmem:[%s2499_s27 + $0x8] sm:$0xff] %v1346_v38 }
 0x33a   : > { %1355 = vst [vmem:[%s2499_s27 + $0x10] sm:$0xff] %v1347_v57  ;;  %1356 = vst [vmem:[%s2499_s27 + $0x18] sm:$0xff] %v1348_v58 }
 0x33b   : > { %1357 = vst [vmem:[%s2499_s27 + $0x20] sm:$0xff] %v1349_v59  ;;  %1358 = vst [vmem:[%s2499_s27 + $0x28] sm:$0xff] %v1350_v60 }
 0x33c   : > { %1359 = vst [vmem:[%s2499_s27 + $0x30] sm:$0xff] %v1351_v61  ;;  %1360 = vst [vmem:[%s2499_s27 + $0x38] sm:$0xff] %v1352_v62 }
 0x33d PF: > { %s2821_s21 = sld [smem:[#allocation21_spill]]  ;;  %s1374_s1 = sshll.u32 %s2499_s27, 4  ;;  %s2646_s1 = int_to_ptr.vmem [resolvable:$true] %s1374_s1 }
 0x33e   : > { %s2822_s8 = sld [smem:[#allocation30_spill]]  ;;  %s2825_s6 = sand.u32 1, %s2073_s19  }
 0x33f   : > { %s2823_s16 = sld [smem:[#allocation42_spill]]  ;;  %s2650_s17 = scalar_lea.sflag [#allocation5], %s2825_s6 }
 0x340   : > { %s1953_s20 = scalar_lea.vmem %s2646_s1, 1024  ;;  %s2110_s23 = smov [#allocation10]  }
 0x341   : > { %p1954_p3 = scmp.ne.s32.totalorder %s2646_s1, %s1953_s20  ;;  %s1957_s24 = sshll.u32 %s2110_s23, 4  ;;  %s1958_s24 = int_to_ptr.vmem [resolvable:$false] %s1957_s24 }
 0x342   : > { %s1959_s29 = scalar_lea.vmem %s1958_s24, 2048  ;;  %p1960_p7 = scmp.lt.s32.totalorder %s2646_s1, %s1958_s24 }
 0x343   : > { %s1618_s28 = sshll.u32 %s2821_s21, 7  ;;  %p1961_p11 = scmp.lt.s32.totalorder %s1959_s29, %s1953_s20 }
 0x344   : > { %p2826_p12 = scmp.ne.s32.totalorder %s2822_s8, 0 }
 0x345   : > { %s2824_s11 = smov %s2823_s16  ;;  %s2643_s0 = scalar_lea.hbm %s2823_s16, %s1618_s28 }
 0x346   : > { %p1955_p4 = pnand %p1954_p3, %p2826_p12  ;;  %p1962_p9 = por %p1961_p11, %p1960_p7 }
 0x348   : > { %p1956_p13 = pneg %p1955_p4 }
 0x34a   : > { %p1963_p2 = pnand %p1962_p9, %p1956_p13 }
 0x34c   : > { %1966 = shalt.err (!%p1963_p2)
}
 0x34d   : > { %s1967_s27 = scalar_lea.hbm %s2643_s0, 1024  ;;  %s1971_s7 = scalar_lea.hbm %s2824_s11, 2048 }
 0x34e   : > { %p1968_p5 = scmp.ne.s32.totalorder %s2643_s0, %s1967_s27  ;;  %p1972_p1 = scmp.lt.s32.totalorder %s2643_s0, %s2824_s11 }
 0x34f   : > { %p1973_p8 = scmp.lt.s32.totalorder %s1971_s7, %s1967_s27 }
 0x350   : > { %p1969_p0 = pnand %p1968_p5, %p2826_p12 }
 0x351   : > { %p1974_p10 = por %p1973_p8, %p1972_p1 }
 0x352   : > { %p1970_p6 = pneg %p1969_p0 }
 0x354   : > { %p1975_p3 = pnand %p1974_p10, %p1970_p6 }
 0x356   : > { %1978 = shalt.err (!%p1975_p3)
}
 0x357   : > { %s2111_s18 = smov 128   ;;  %s2112_s2 = smov 256  }
 0x358   : > { %s2113_s3 = smov 8  }
 0x359   : > { %1706 = dma.vmem_to_hbm [thread:$0]  (%p2826_p12), %s2646_s1, 1024, %s2643_s0, %s2650_s17, %s2111_s18, %s2112_s2, %s2113_s3  }
 0x35a PF: > { %s2827_s13 = sld [smem:[#allocation18_spill]]  ;;  %p1718_p4 = scmp.ge.s32.totalorder %s2097_s25, 2 }
 0x35b   : > { %s2828_s4 = sld [smem:[#allocation31_spill]] }
 0x360   : > { %s1389_s14 = sand.u32 1, %s2827_s13  }
 0x361   : > { %p2829_p13 = scmp.ne.s32.totalorder %s2828_s4, 0  ;;  %s1390_s22 = scalar_lea.sflag [#allocation5], %s1389_s14 }
 0x363   : > { %p1713_p7 = pnand %p1718_p4, %p2829_p13 }
 0x365   : > { %p1714_p11 = pneg %p1713_p7 }
 0x367   : > { %2044 = dma.done.wait (%p1714_p11), %s1390_s22, 1024  }
 0x368   : > { %2046 = vsyncadd (%p1714_p11), %s1390_s22, 4294966272  ;;  %s27_s25 = sadd.s32 1, %s2097_s25   ;;  %s2831_s13 = sld [smem:[#allocation15_spill]] }
 0x369   : > { %p2678_p9 = scmp.ge.s32.totalorder %s27_s25, 6   ;;  %s2832_s8 = sld [smem:[#allocation28_spill]] }
 0x36a   : > { %s2833_s16 = sld [smem:[#allocation17_spill]]  ;;  %s2842_s14 = smov %s2057_s15 }
 0x36b   : > { %s2834_s17 = sld [smem:[#allocation26_spill]]  ;;  %s2844_s18 = smov %s2073_s19 }
 0x36c   : > { %s2835_s28 = sld [smem:[#allocation19_spill]] }
 0x36d   : > { %s2836_s20 = sld [smem:[#allocation27_spill]] }
 0x36e   : > { %s2837_s30 = sld [smem:[#allocation22_spill]] }
 0x36f   : > { %s2838_s22 = sld [smem:[#allocation23_spill]]  ;;  %s2843_s15 = smov %s2832_s8 }
 0x370   : > { %s2839_s23 = sld [smem:[#allocation24_spill]]  ;;  %26 = sbr.rel (!%p2678_p9) target bundleno = 23 (0x17), region = 195 }
 0x371   : > { %s2840_s24 = sld [smem:[#allocation25_spill]] }
 0x372   : > { %s2845_s19 = smov %s2835_s28 }
 0x374   : > { %s2846_s21 = smov %s2837_s30 }
 0x375   :  { %1395 = vsyncpa [#allocation4], 1 }
 0x376   :  { %1397 = vsyncpa [#allocation4 + $0x1], 1 }
 0x377   :  { %1398 = vsyncpa [#allocation7], 1 }
 0x378   :  { %1399 = vsyncpa [#allocation5], 1 }
 0x379   :  { %1401 = vsyncpa [#allocation5 + $0x1], 1 }

</bundles_post_ra>
